<compile_context>
chip_gen: v7x
topology: tpu7x:2x2x1
jax: 0.10.0
libtpu: 0.0.40
codegen_flags: <defaults>
</compile_context>

<pallas_src>
import jax
import jax.numpy as jnp
from jax.experimental import pallas as pl
from jax.experimental.pallas import tpu as pltpu


# ------------------------------ in-kernel helpers ----------------------------

def _softmax_lastdim(s, approx):
    """Row softmax over the last (lane) axis; divide on the EUP."""
    m = jnp.max(s, axis=-1, keepdims=True)
    ex = jnp.exp(s - m)
    denom = jnp.sum(ex, axis=-1, keepdims=True)
    return ex * pl.reciprocal(denom, approx=approx)


def _scores_softmax_store(q, enc_ref, out_ref, s_ref, approx):
    """q: (bb, H) f32 query block; enc block (T, bb, H); out block (bb, T).

    score[b, t] = <q[b], enc[t, b]>, softmax over t for every batch row b,
    stored lane-dense as (bb, T) (unmasked vst once T is a lane multiple).
    """
    T, bb, H = enc_ref.shape
    if T % 8 == 0 and bb % 8 == 0:
        # Vectorized path: whole-block VPU multiply + lane reduce -> (T, bb),
        # then one tiny XLU transpose of the score tile to (bb, T).
        e = enc_ref[...].astype(jnp.float32)
        s_bt = jnp.sum(e * q[None, :, :], axis=-1).T
    else:
        # Unaligned / tiny blocks (demo bb=2): build the (bb, T) tile column by
        # column in VMEM scratch (static column index; cheap masked VMEM
        # stores, no O(T^2*bb) where-scatter).
        for t in range(T):
            s_ref[:, t:t + 1] = jnp.sum(
                enc_ref[t].astype(jnp.float32) * q, axis=-1, keepdims=True)
        s_bt = s_ref[...]
    out_ref[...] = _softmax_lastdim(s_bt, approx).astype(out_ref.dtype)


# ---------------------------------- kernels ----------------------------------

def _make_dot_kernel(approx):
    def kernel(hid_ref, enc_ref, out_ref, s_ref):
        q = hid_ref[0].astype(jnp.float32)                    # (bb, H)
        _scores_softmax_store(q, enc_ref, out_ref, s_ref, approx)
    return kernel


def _make_general_kernel(approx):
    def kernel(hid_ref, enc_ref, w_ref, out_ref, s_ref):
        # w_ref: nn.Linear(H, H) weight in PyTorch (out, in) layout.
        # <h, W e + b> == <h @ W, e> + <h, b>; the <h, b> term is constant
        # over t and cancels in the softmax -> project the single hidden
        # vector per batch row instead of every encoder step.
        q = jnp.dot(hid_ref[0], w_ref[...],
                    preferred_element_type=jnp.float32)       # (bb, H)
        _scores_softmax_store(q, enc_ref, out_ref, s_ref, approx)
    return kernel


def _make_concat_kernel(approx):
    def kernel(hid_ref, enc_ref, wh_ref, we_ref, b_ref, v_ref, out_ref, s_ref):
        # hid (1, bb, H), enc (T, bb, H), wh/we (H, H) halves of W^T (in, out),
        # b/v (1, H), out (bb, T), s_ref (bb, T) f32 scratch.
        T, bb, H = enc_ref.shape
        # Bias folded into the hidden projection: added once per (bb, H).
        hp = jnp.dot(hid_ref[0], wh_ref[...],
                     preferred_element_type=jnp.float32) + b_ref[...]   # (bb, H)
        we = we_ref[...]
        v = v_ref[...]                                                  # (1, H)
        if T % 8 == 0 and bb % 8 == 0 and H % 128 == 0:
            # Aligned: one (T*bb, H) @ (H, H) MXU call (layout no-op reshape),
            # RHS weights pushed once instead of T times.
            en = jnp.dot(enc_ref[...].reshape(T * bb, H), we,
                         preferred_element_type=jnp.float32).reshape(T, bb, H)
            en = jnp.tanh(en + hp[None, :, :])
            s_bt = jnp.sum(en * v[None, :, :], axis=-1).T               # (bb, T)
        else:
            # Unaligned / tiny demo shapes: per-timestep standard (bb,H)@(H,H)
            # matmuls; each (bb, 1) score column goes straight into VMEM
            # scratch (no where-scatter).
            for t in range(T):
                en = jnp.tanh(jnp.dot(enc_ref[t], we,
                                      preferred_element_type=jnp.float32) + hp)
                s_ref[:, t:t + 1] = jnp.sum(en * v, axis=-1, keepdims=True)
            s_bt = s_ref[...]
        out_ref[...] = _softmax_lastdim(s_bt, approx).astype(out_ref.dtype)
    return kernel


# ---------------------------------- wrapper -----------------------------------

def _pick_batch_block(B, T, H, itemsize):
    """Batch rows per grid step.

    Residency per step ~= 2x enc block (double-buffered) + ~2 f32 in-kernel
    working copies of the block (upcast product / tanh energy) + small
    hid/out blocks + weights.  Keep that inside the 32 MiB scoped VMEM we
    request (v5e/v6e: 128 MiB physical, v7x: 64 MiB physical)."""
    sub = max(8, 32 // max(1, itemsize))          # sublane multiple: f32 8, bf16 16, int8 32
    per_row = T * H * (2 * itemsize + 8)
    budget = 24 * 1024 * 1024
    bb = max(sub, (budget // max(per_row, 1)) // sub * sub)
    # Keep >=2 grid steps when B is large enough so the "parallel" batch axis
    # can be sharded across the 2 TensorCores on v7x (one extra ~0.35us grid
    # step elsewhere - negligible).
    if B >= 2 * sub:
        half = -(-((B + 1) // 2) // sub) * sub    # round_up(ceil(B/2), sub)
        bb = min(bb, max(sub, half))
    # TODO(synk): when T*H is so large that even bb=sub exceeds the budget,
    # tile T with an online softmax (running max/denominator in VMEM scratch,
    # T as a trailing "arbitrary" grid axis) instead of shrinking bb further.
    return min(bb, B)


def attn_forward(method, hidden, encoder_outputs, params, batch_block=None,
                 approx_recip=False):
    """hidden: (1, B, H), encoder_outputs: (T, B, H)  ->  (B, 1, T).

    Feed bf16 hidden/encoder_outputs in production (kernel accumulates in f32);
    set approx_recip=True in production for an EUP-only softmax divide."""
    T, B, H = encoder_outputs.shape
    itemsize = encoder_outputs.dtype.itemsize
    bb = _pick_batch_block(B, T, H, itemsize) if batch_block is None else batch_block
    nb = pl.cdiv(B, bb)

    # Blocks index the native (T, B, H) layout directly; no transpose / cast
    # round-trips of the big tensors through HBM before or after the kernel.
    hid_spec = pl.BlockSpec((1, bb, H), lambda i: (0, i, 0))
    enc_spec = pl.BlockSpec((T, bb, H), lambda i: (0, i, 0))
    out_spec = pl.BlockSpec((bb, T), lambda i: (i, 0))          # lane-dense output
    full = lambda *shape: pl.BlockSpec(shape, lambda i: (0,) * len(shape))

    compiler_params = pltpu.CompilerParams(
        dimension_semantics=("parallel",),          # batch blocks independent (v7x megacore)
        vmem_limit_bytes=32 * 1024 * 1024,
    )

    base_bytes = (T * B * H + B * H) * itemsize + B * T * 4
    scratch = [pltpu.VMEM((bb, T), jnp.float32)]    # (bb, T) score assembly tile

    if method == "dot":
        kernel = _make_dot_kernel(approx_recip)
        args = (hidden, encoder_outputs)
        in_specs = [hid_spec, enc_spec]
        cost = pl.CostEstimate(flops=2 * T * B * H + 4 * B * T,
                               transcendentals=B * T,
                               bytes_accessed=base_bytes)
    elif method == "general":
        w = params["w_general"]                     # (out, in) layout
        kernel = _make_general_kernel(approx_recip)
        args = (hidden, encoder_outputs, w)
        in_specs = [hid_spec, enc_spec, full(H, H)]
        cost = pl.CostEstimate(flops=2 * B * H * H + 2 * T * B * H + 4 * B * T,
                               transcendentals=B * T,
                               bytes_accessed=base_bytes + H * H * w.dtype.itemsize)
    elif method == "concat":
        C = params["w_concat"]                      # nn.Linear(2H, H) weight, (H, 2H)
        wh = C[:, :H].T                             # (H, H): W^T half hitting the hidden vector
        we = C[:, H:].T                             # (H, H): W^T half hitting the encoder steps
        bias = params["b_concat"].reshape(1, H)
        v = params["v"].reshape(1, H)
        kernel = _make_concat_kernel(approx_recip)
        args = (hidden, encoder_outputs, wh, we, bias, v)
        in_specs = [hid_spec, enc_spec, full(H, H), full(H, H), full(1, H), full(1, H)]
        cost = pl.CostEstimate(
            flops=2 * T * B * H * H + 2 * B * H * H + 4 * T * B * H + 4 * B * T,
            transcendentals=T * B * H + B * T,
            bytes_accessed=base_bytes + (2 * H * H + 2 * H) * 4)
    else:
        raise ValueError(method, "is not an appropriate attention method.")

    probs = pl.pallas_call(
        kernel,
        out_shape=jax.ShapeDtypeStruct((B, T), jnp.float32),
        grid=(nb,),
        in_specs=in_specs,
        out_specs=out_spec,
        scratch_shapes=scratch,
        compiler_params=compiler_params,
        cost_estimate=cost,
    )(*args)
    return probs[:, None, :]                        # (B, 1, T); unit-dim insert only


# ----------------------------- pure-JAX reference -----------------------------

def attn_reference(method, hidden, encoder_outputs, params):
    if method == "dot":
        scores = jnp.sum(hidden * encoder_outputs, axis=2)                     # (T, B)
    elif method == "general":
        energy = encoder_outputs @ params["w_general"].T + params["b_general"]
        scores = jnp.sum(hidden * energy, axis=2)
    elif method == "concat":
        hexp = jnp.broadcast_to(hidden, encoder_outputs.shape)
        x = jnp.concatenate([hexp, encoder_outputs], axis=2)                   # (T, B, 2H)
        energy = jnp.tanh(x @ params["w_concat"].T + params["b_concat"])
        scores = jnp.sum(params["v"] * energy, axis=2)
    scores = scores.T                                                          # (B, T)
    return jax.nn.softmax(scores, axis=1)[:, None, :]                          # (B, 1, T)


# ------------------------------------ main -------------------------------------

if __name__ == "__main__":
    B, T, H = 2, 8, 32
    key = jax.random.PRNGKey(0)
    k_hid, k_enc, k_wg, k_bg, k_wc, k_bc, k_v = jax.random.split(key, 7)

    hidden = jax.random.normal(k_hid, (1, B, H), dtype=jnp.float32)
    encoder_outputs = jax.random.normal(k_enc, (T, B, H), dtype=jnp.float32)

    scale = 1.0 / jnp.sqrt(jnp.float32(H))
    params = {
        # 'general': nn.Linear(H, H) -> weight in PyTorch (out, in) layout + bias
        "w_general": jax.random.normal(k_wg, (H, H), dtype=jnp.float32) * scale,
        "b_general": jax.random.normal(k_bg, (H,), dtype=jnp.float32) * scale,
        # 'concat': nn.Linear(2H, H) -> weight (H, 2H) + bias, plus v parameter
        "w_concat": jax.random.normal(k_wc, (H, 2 * H), dtype=jnp.float32) * scale,
        "b_concat": jax.random.normal(k_bc, (H,), dtype=jnp.float32) * scale,
        "v": jax.random.normal(k_v, (H,), dtype=jnp.float32),
    }

    ok = True
    for method in ("dot", "general", "concat"):
        out = jax.block_until_ready(
            attn_forward(method, hidden, encoder_outputs, params, approx_recip=False))
        ref = attn_reference(method, hidden, encoder_outputs, params)
        assert out.shape == (B, 1, T), (method, out.shape)
        # 5e-5: covers the 'general' reassociation (<h, W e> -> <h W, e>) and
        # multi-pass f32 MXU vs XLA rounding differences.
        if not jnp.allclose(out, ref, atol=5e-5, rtol=5e-5):
            ok = False
            print(f"MISMATCH in method={method}: max abs err "
                  f"{float(jnp.max(jnp.abs(out - ref)))}")

    if ok:
        print("KERNEL_OK")
</pallas_src>

<mosaic_0001>
module attributes {stable_mosaic.version = 11 : i64} {
  func.func @kernel(%arg0: i32, %arg1: memref<1x2x32xf32, #tpu.memory_space<vmem>>, %arg2: memref<8x2x32xf32, #tpu.memory_space<vmem>>, %arg3: memref<2x8xf32, #tpu.memory_space<vmem>>, %arg4: memref<2x8xf32, #tpu.memory_space<vmem>>) attributes {dimension_semantics = [#tpu.dimension_semantics<parallel>], iteration_bounds = array<i64: 1>, scalar_prefetch = 0 : i64, scratch_operands = 1 : i64, tpu.core_type = #tpu.core_type<tc>, window_params = [{transform_indices = @transform_0, window_bounds = array<i64: 1, 2, 32>}, {transform_indices = @transform_1, window_bounds = array<i64: 8, 2, 32>}, {transform_indices = @transform_2, window_bounds = array<i64: 2, 8>}]} {
    %c0 = arith.constant 0 : index
    %c0_0 = arith.constant 0 : index
    %c0_1 = arith.constant 0 : index
    %0 = vector.load %arg1[%c0, %c0_0, %c0_1] : memref<1x2x32xf32, #tpu.memory_space<vmem>>, vector<1x2x32xf32>
    %1 = vector.shape_cast %0 : vector<1x2x32xf32> to vector<2x32xf32>
    %c0_2 = arith.constant 0 : index
    %c0_3 = arith.constant 0 : index
    %c0_4 = arith.constant 0 : index
    %2 = vector.load %arg2[%c0_2, %c0_3, %c0_4] : memref<8x2x32xf32, #tpu.memory_space<vmem>>, vector<1x2x32xf32>
    %3 = vector.shape_cast %2 : vector<1x2x32xf32> to vector<2x32xf32>
    %4 = arith.mulf %3, %1 : vector<2x32xf32>
    %cst = arith.constant dense<0.000000e+00> : vector<2xf32>
    %5 = vector.multi_reduction <add>, %4, %cst [1] : vector<2x32xf32> to vector<2xf32>
    %6 = vector.shape_cast %5 : vector<2xf32> to vector<2x1xf32>
    %c0_5 = arith.constant 0 : index
    %c0_6 = arith.constant 0 : index
    %7 = vector.load %arg4[%c0_5, %c0_6] : memref<2x8xf32, #tpu.memory_space<vmem>>, vector<2x1xf32>
    tpu.vector_store %arg4[%c0_5, %c0_6], %6 {strides = array<i32>} : memref<2x8xf32, #tpu.memory_space<vmem>>, vector<2x1xf32>,
    %c1 = arith.constant 1 : index
    %c0_7 = arith.constant 0 : index
    %c0_8 = arith.constant 0 : index
    %8 = vector.load %arg2[%c1, %c0_7, %c0_8] : memref<8x2x32xf32, #tpu.memory_space<vmem>>, vector<1x2x32xf32>
    %9 = vector.shape_cast %8 : vector<1x2x32xf32> to vector<2x32xf32>
    %10 = arith.mulf %9, %1 : vector<2x32xf32>
    %cst_9 = arith.constant dense<0.000000e+00> : vector<2xf32>
    %11 = vector.multi_reduction <add>, %10, %cst_9 [1] : vector<2x32xf32> to vector<2xf32>
    %12 = vector.shape_cast %11 : vector<2xf32> to vector<2x1xf32>
    %c0_10 = arith.constant 0 : index
    %c1_11 = arith.constant 1 : index
    %13 = vector.load %arg4[%c0_10, %c1_11] : memref<2x8xf32, #tpu.memory_space<vmem>>, vector<2x1xf32>
    tpu.vector_store %arg4[%c0_10, %c1_11], %12 {strides = array<i32>} : memref<2x8xf32, #tpu.memory_space<vmem>>, vector<2x1xf32>,
    %c2 = arith.constant 2 : index
    %c0_12 = arith.constant 0 : index
    %c0_13 = arith.constant 0 : index
    %14 = vector.load %arg2[%c2, %c0_12, %c0_13] : memref<8x2x32xf32, #tpu.memory_space<vmem>>, vector<1x2x32xf32>
    %15 = vector.shape_cast %14 : vector<1x2x32xf32> to vector<2x32xf32>
    %16 = arith.mulf %15, %1 : vector<2x32xf32>
    %cst_14 = arith.constant dense<0.000000e+00> : vector<2xf32>
    %17 = vector.multi_reduction <add>, %16, %cst_14 [1] : vector<2x32xf32> to vector<2xf32>
    %18 = vector.shape_cast %17 : vector<2xf32> to vector<2x1xf32>
    %c0_15 = arith.constant 0 : index
    %c2_16 = arith.constant 2 : index
    %19 = vector.load %arg4[%c0_15, %c2_16] : memref<2x8xf32, #tpu.memory_space<vmem>>, vector<2x1xf32>
    tpu.vector_store %arg4[%c0_15, %c2_16], %18 {strides = array<i32>} : memref<2x8xf32, #tpu.memory_space<vmem>>, vector<2x1xf32>,
    %c3 = arith.constant 3 : index
    %c0_17 = arith.constant 0 : index
    %c0_18 = arith.constant 0 : index
    %20 = vector.load %arg2[%c3, %c0_17, %c0_18] : memref<8x2x32xf32, #tpu.memory_space<vmem>>, vector<1x2x32xf32>
    %21 = vector.shape_cast %20 : vector<1x2x32xf32> to vector<2x32xf32>
    %22 = arith.mulf %21, %1 : vector<2x32xf32>
    %cst_19 = arith.constant dense<0.000000e+00> : vector<2xf32>
    %23 = vector.multi_reduction <add>, %22, %cst_19 [1] : vector<2x32xf32> to vector<2xf32>
    %24 = vector.shape_cast %23 : vector<2xf32> to vector<2x1xf32>
    %c0_20 = arith.constant 0 : index
    %c3_21 = arith.constant 3 : index
    %25 = vector.load %arg4[%c0_20, %c3_21] : memref<2x8xf32, #tpu.memory_space<vmem>>, vector<2x1xf32>
    tpu.vector_store %arg4[%c0_20, %c3_21], %24 {strides = array<i32>} : memref<2x8xf32, #tpu.memory_space<vmem>>, vector<2x1xf32>,
    %c4 = arith.constant 4 : index
    %c0_22 = arith.constant 0 : index
    %c0_23 = arith.constant 0 : index
    %26 = vector.load %arg2[%c4, %c0_22, %c0_23] : memref<8x2x32xf32, #tpu.memory_space<vmem>>, vector<1x2x32xf32>
    %27 = vector.shape_cast %26 : vector<1x2x32xf32> to vector<2x32xf32>
    %28 = arith.mulf %27, %1 : vector<2x32xf32>
    %cst_24 = arith.constant dense<0.000000e+00> : vector<2xf32>
    %29 = vector.multi_reduction <add>, %28, %cst_24 [1] : vector<2x32xf32> to vector<2xf32>
    %30 = vector.shape_cast %29 : vector<2xf32> to vector<2x1xf32>
    %c0_25 = arith.constant 0 : index
    %c4_26 = arith.constant 4 : index
    %31 = vector.load %arg4[%c0_25, %c4_26] : memref<2x8xf32, #tpu.memory_space<vmem>>, vector<2x1xf32>
    tpu.vector_store %arg4[%c0_25, %c4_26], %30 {strides = array<i32>} : memref<2x8xf32, #tpu.memory_space<vmem>>, vector<2x1xf32>,
    %c5 = arith.constant 5 : index
    %c0_27 = arith.constant 0 : index
    %c0_28 = arith.constant 0 : index
    %32 = vector.load %arg2[%c5, %c0_27, %c0_28] : memref<8x2x32xf32, #tpu.memory_space<vmem>>, vector<1x2x32xf32>
    %33 = vector.shape_cast %32 : vector<1x2x32xf32> to vector<2x32xf32>
    %34 = arith.mulf %33, %1 : vector<2x32xf32>
    %cst_29 = arith.constant dense<0.000000e+00> : vector<2xf32>
    %35 = vector.multi_reduction <add>, %34, %cst_29 [1] : vector<2x32xf32> to vector<2xf32>
    %36 = vector.shape_cast %35 : vector<2xf32> to vector<2x1xf32>
    %c0_30 = arith.constant 0 : index
    %c5_31 = arith.constant 5 : index
    %37 = vector.load %arg4[%c0_30, %c5_31] : memref<2x8xf32, #tpu.memory_space<vmem>>, vector<2x1xf32>
    tpu.vector_store %arg4[%c0_30, %c5_31], %36 {strides = array<i32>} : memref<2x8xf32, #tpu.memory_space<vmem>>, vector<2x1xf32>,
    %c6 = arith.constant 6 : index
    %c0_32 = arith.constant 0 : index
    %c0_33 = arith.constant 0 : index
    %38 = vector.load %arg2[%c6, %c0_32, %c0_33] : memref<8x2x32xf32, #tpu.memory_space<vmem>>, vector<1x2x32xf32>
    %39 = vector.shape_cast %38 : vector<1x2x32xf32> to vector<2x32xf32>
    %40 = arith.mulf %39, %1 : vector<2x32xf32>
    %cst_34 = arith.constant dense<0.000000e+00> : vector<2xf32>
    %41 = vector.multi_reduction <add>, %40, %cst_34 [1] : vector<2x32xf32> to vector<2xf32>
    %42 = vector.shape_cast %41 : vector<2xf32> to vector<2x1xf32>
    %c0_35 = arith.constant 0 : index
    %c6_36 = arith.constant 6 : index
    %43 = vector.load %arg4[%c0_35, %c6_36] : memref<2x8xf32, #tpu.memory_space<vmem>>, vector<2x1xf32>
    tpu.vector_store %arg4[%c0_35, %c6_36], %42 {strides = array<i32>} : memref<2x8xf32, #tpu.memory_space<vmem>>, vector<2x1xf32>,
    %c7 = arith.constant 7 : index
    %c0_37 = arith.constant 0 : index
    %c0_38 = arith.constant 0 : index
    %44 = vector.load %arg2[%c7, %c0_37, %c0_38] : memref<8x2x32xf32, #tpu.memory_space<vmem>>, vector<1x2x32xf32>
    %45 = vector.shape_cast %44 : vector<1x2x32xf32> to vector<2x32xf32>
    %46 = arith.mulf %45, %1 : vector<2x32xf32>
    %cst_39 = arith.constant dense<0.000000e+00> : vector<2xf32>
    %47 = vector.multi_reduction <add>, %46, %cst_39 [1] : vector<2x32xf32> to vector<2xf32>
    %48 = vector.shape_cast %47 : vector<2xf32> to vector<2x1xf32>
    %c0_40 = arith.constant 0 : index
    %c7_41 = arith.constant 7 : index
    %49 = vector.load %arg4[%c0_40, %c7_41] : memref<2x8xf32, #tpu.memory_space<vmem>>, vector<2x1xf32>
    tpu.vector_store %arg4[%c0_40, %c7_41], %48 {strides = array<i32>} : memref<2x8xf32, #tpu.memory_space<vmem>>, vector<2x1xf32>,
    %c0_42 = arith.constant 0 : index
    %c0_43 = arith.constant 0 : index
    %50 = vector.load %arg4[%c0_42, %c0_43] : memref<2x8xf32, #tpu.memory_space<vmem>>, vector<2x8xf32>
    %cst_44 = arith.constant dense<0xFF800000> : vector<2xf32>
    %51 = vector.multi_reduction <maximumf>, %50, %cst_44 [1] : vector<2x8xf32> to vector<2xf32>
    %52 = vector.shape_cast %51 : vector<2xf32> to vector<2x1xf32>
    %53 = vector.broadcast %52 : vector<2x1xf32> to vector<2x8xf32>
    %54 = arith.subf %50, %53 : vector<2x8xf32>
    %55 = math.exp %54 : vector<2x8xf32>
    %cst_45 = arith.constant dense<0.000000e+00> : vector<2xf32>
    %56 = vector.multi_reduction <add>, %55, %cst_45 [1] : vector<2x8xf32> to vector<2xf32>
    %57 = vector.shape_cast %56 : vector<2xf32> to vector<2x1xf32>
    %58 = tpu.reciprocal %57 : vector<2x1xf32> -> vector<2x1xf32>
    %59 = vector.broadcast %58 : vector<2x1xf32> to vector<2x8xf32>
    %60 = arith.mulf %55, %59 : vector<2x8xf32>
    %c0_46 = arith.constant 0 : index
    %c0_47 = arith.constant 0 : index
    %61 = vector.load %arg3[%c0_46, %c0_47] : memref<2x8xf32, #tpu.memory_space<vmem>>, vector<2x8xf32>
    tpu.vector_store %arg3[%c0_46, %c0_47], %60 {strides = array<i32>} : memref<2x8xf32, #tpu.memory_space<vmem>>, vector<2x8xf32>,
    return
  }
  func.func @transform_0(%arg0: i32) -> (i32, i32, i32) {
    %c0_i32 = arith.constant 0 : i32
    %c0_i32_0 = arith.constant 0 : i32
    %c0_i32_1 = arith.constant 0 : i32
    return %c0_i32, %arg0, %c0_i32_0 : i32, i32, i32
  }
  func.func @transform_1(%arg0: i32) -> (i32, i32, i32) {
    %c0_i32 = arith.constant 0 : i32
    %c0_i32_0 = arith.constant 0 : i32
    %c0_i32_1 = arith.constant 0 : i32
    return %c0_i32, %arg0, %c0_i32_0 : i32, i32, i32
  }
  func.func @transform_2(%arg0: i32) -> (i32, i32) {
    %c0_i32 = arith.constant 0 : i32
    %c0_i32_0 = arith.constant 0 : i32
    return %arg0, %c0_i32 : i32, i32
  }
}

</mosaic_0001>

<bundles_post_ra>
// kernel: tpu_custom_call.1
= control target key start
LH: loop header
LB: loop body
LE: loop exit
PB: predicated region body
PF: predicated region fallthrough
CT: control target
= control target key end

     0   :  { %7 = vsyncpa [#allocation4], 0  ;;  %s288_s0 = inlined_call_operand.hbm [shape: f32[1,2,32], index: 0, kind: input, shape index: {}]   ;;  %s289_s1 = inlined_call_operand.hbm [shape: f32[8,2,32], index: 1, kind: input, shape index: {}]   ;;  %s290_s2 = inlined_call_operand.hbm [shape: f32[2,8], index: 2, kind: output, shape index: {}]  }
   0x1   :  { %8 = vsyncpa [#allocation7], 0 }
   0x2   :  { %9 = vsyncpa [#allocation5], 0  ;;  %s214_s9 = smov [#allocation3]   ;;  %s215_s11 = smov [#allocation6]  }
   0x3   :  { %s16_s10 = sshll.u32 %s214_s9, 4  ;;  %s25_s12 = sshll.u32 %s215_s11, 4  ;;  %s17_s10 = int_to_ptr.vmem [resolvable:$true] %s16_s10  ;;  %s234_s12 = int_to_ptr.vmem [resolvable:$true] %s25_s12 }
   0x4   :  { %s142_s15 = scalar_lea.hbm %s288_s0, 32 }
   0x5   :  { %p143_p0 = scmp.ne.s32.totalorder %s288_s0, %s142_s15  ;;  %p146_p1 = scmp.lt.u32.totalorder %s142_s15, %s288_s0 }
   0x7   :  { %p148_p2 = pnand %p146_p1, %p143_p0 }
   0x9   :  { %151 = shalt.err (!%p148_p2)
}
   0xa   :  { %s152_s20 = scalar_lea.vmem %s17_s10, 32  ;;  %p157_p4 = scmp.lt.s32.totalorder %s17_s10, %s17_s10 }
   0xb   :  { %p153_p3 = scmp.ne.s32.totalorder %s17_s10, %s152_s20  ;;  %p158_p5 = scmp.lt.s32.totalorder %s152_s20, %s152_s20 }
   0xd   :  { %p159_p6 = por %p158_p5, %p157_p4 }
   0xf   :  { %p160_p7 = pnand %p159_p6, %p153_p3 }
  0x11   :  { %163 = shalt.err (!%p160_p7)
}
  0x12   :  { %19 = dma.hbm_to_vmem [thread:$0]  %s288_s0, 32, %s17_s10, [#allocation4]  }
  0x13   :  { %s164_s25 = scalar_lea.hbm %s289_s1, 256 }
  0x14   :  { %p165_p8 = scmp.ne.s32.totalorder %s289_s1, %s164_s25  ;;  %p168_p9 = scmp.lt.u32.totalorder %s164_s25, %s289_s1 }
  0x16   :  { %p170_p10 = pnand %p168_p9, %p165_p8 }
  0x18   :  { %173 = shalt.err (!%p170_p10)
}
  0x19   :  { %s174_s30 = scalar_lea.vmem %s234_s12, 256  ;;  %p179_p12 = scmp.lt.s32.totalorder %s234_s12, %s234_s12 }
  0x1a   :  { %p175_p11 = scmp.ne.s32.totalorder %s234_s12, %s174_s30  ;;  %p180_p13 = scmp.lt.s32.totalorder %s174_s30, %s174_s30 }
  0x1c   :  { %p181_p0 = por %p180_p13, %p179_p12 }
  0x1e   :  { %p182_p1 = pnand %p181_p0, %p175_p11 }
  0x20   :  { %185 = shalt.err (!%p182_p1)
}
  0x21   :  { %s216_s0 = smov 32   ;;  %s217_s3 = smov 2  }
  0x22   :  { %31 = dma.hbm_to_vmem [thread:$0]  %s289_s1, 256, %s234_s12, [#allocation7], %s216_s0, %s216_s0, %s217_s3  }
  0x23   :  { %208 = dma.done.wait [#allocation4], 32  }
  0x24   :  { %209 = vsyncadd [#allocation4], 4294967264 }
  0x25   :  { %210 = dma.done.wait [#allocation7], 256  }
  0x26   :  { %211 = vsyncadd [#allocation7], 4294967040  ;;  %vm41_vm0 = vcmask 254976   ;;  %v38_v0 = vld [vmem:[#allocation3] sm:$0x3]  ;;  %vm45_vm1 = vcmask 1024  }
  0x27   :  { %v39_v1 = vld [vmem:[#allocation6] sm:$0x3]  ;;  %v56_v2 = vld [vmem:[#allocation6 + $0x4] sm:$0x3]  ;;  %v48_v5 = vld [vmem:[#allocation6 + $0x2] sm:$0x3] }
  0x28   :  { %v40_v3 = vmul.f32 %v39_v1, %v38_v0  ;;  %v57_v4 = vmul.f32 %v56_v2, %v38_v0  ;;  %v64_v6 = vld [vmem:[#allocation6 + $0x6] sm:$0x3]  ;;  %v49_v7 = vmul.f32 %v48_v5, %v38_v0  ;;  %v72_v9 = vld [vmem:[#allocation6 + $0x8] sm:$0x3]  ;;  %v80_v10 = vld [vmem:[#allocation6 + $0xa] sm:$0x3] }
  0x29   :  { %v65_v8 = vmul.f32 %v64_v6, %v38_v0  ;;  %v73_v15 = vmul.f32 %v72_v9, %v38_v0  ;;  %v81_v16 = vmul.f32 %v80_v10, %v38_v0  ;;  %v88_v17 = vld [vmem:[#allocation6 + $0xc] sm:$0x3]  ;;  %v96_v18 = vld [vmem:[#allocation6 + $0xe] sm:$0x3]  ;;  %vm53_vm2 = vcmask 9224   ;;  %s218_s1 = smov [#allocation8]  }
  0x2a   :  { %v42_v11 = vsel %vm41_vm0, %v40_v3, 0.0  ;;  %v58_v12 = vsel %vm41_vm0, %v57_v4, 0.0  ;;  %v50_v13 = vsel %vm41_vm0, %v49_v7, 0.0  ;;  %v89_v21 = vmul.f32 %v88_v17, %v38_v0  ;;  %s123_s6 = sshll.u32 %s218_s1, 4  ;;  %s124_s6 = int_to_ptr.vmem [resolvable:$true] %s123_s6 }
  0x2b   :  { %43 = vadd.xlane.f32.xlu0 %v42_v11  ;;  %59 = vadd.xlane.f32.xlu1 %v58_v12  ;;  %v66_v14 = vsel %vm41_vm0, %v65_v8, 0.0  ;;  %v74_v19 = vsel %vm41_vm0, %v73_v15, 0.0  ;;  %v82_v20 = vsel %vm41_vm0, %v81_v16, 0.0  ;;  %v97_v22 = vmul.f32 %v96_v18, %v38_v0  ;;  %s186_s7 = scalar_lea.vmem %s124_s6, 32  ;;  %p191_p3 = scmp.lt.s32.totalorder %s124_s6, %s124_s6 }
  0x2c   :  { %v90_v23 = vsel %vm41_vm0, %v89_v21, 0.0  ;;  %vm61_vm3 = vcmask 17424   ;;  %vm69_vm4 = vcmask 25624   ;;  %vm77_vm5 = vcmask 33824   ;;  %p187_p2 = scmp.ne.s32.totalorder %s124_s6, %s186_s7  ;;  %p192_p4 = scmp.lt.s32.totalorder %s186_s7, %s186_s7 }
  0x2d   :  { %v98_v24 = vsel %vm41_vm0, %v97_v22, 0.0  ;;  %vm85_vm6 = vcmask 42024   ;;  %vm93_vm7 = vcmask 50224   ;;  %vm101_vm8 = vcmask 58424  }
  0x2e   :  { %vm104_vm9 = vcmask 58368   ;;  %p193_p5 = por %p192_p4, %p191_p3 }
  0x2f   :  { %51 = vadd.xlane.f32.xlu0 %v50_v13  ;;  %67 = vadd.xlane.f32.xlu1 %v66_v14 }
  0x30   :  { %p194_p6 = pnand %p193_p5, %p187_p2 }
  0x33   :  { %75 = vadd.xlane.f32.xlu0 %v74_v19  ;;  %83 = vadd.xlane.f32.xlu1 %v82_v20 }
  0x37   :  { %91 = vadd.xlane.f32.xlu0 %v90_v23  ;;  %99 = vadd.xlane.f32.xlu1 %v98_v24 }
  0xb8   :  { %v44_v25 = vpop.xlane.xlu0 %43  ;;  %v60_v26 = vpop.xlane.xlu1 %59 }
  0xb9   :  { %46 = vst.msk [vmem:[#allocation2] sm:$0x3] %vm45_vm1, %v44_v25 }
  0xbc   :  { %v52_v27 = vpop.xlane.xlu0 %51  ;;  %v68_v28 = vpop.xlane.xlu1 %67 }
  0xbd   :  { %54 = vst.msk [vmem:[#allocation2] sm:$0x3] %vm53_vm2, %v52_v27 }
  0xbe   :  { %62 = vst.msk [vmem:[#allocation2] sm:$0x3] %vm61_vm3, %v60_v26 }
  0xbf   :  { %70 = vst.msk [vmem:[#allocation2] sm:$0x3] %vm69_vm4, %v68_v28 }
  0xc0   :  { %v76_v29 = vpop.xlane.xlu0 %75  ;;  %v84_v30 = vpop.xlane.xlu1 %83 }
  0xc1   :  { %78 = vst.msk [vmem:[#allocation2] sm:$0x3] %vm77_vm5, %v76_v29 }
  0xc2   :  { %86 = vst.msk [vmem:[#allocation2] sm:$0x3] %vm85_vm6, %v84_v30 }
  0xc4   :  { %v92_v31 = vpop.xlane.xlu0 %91  ;;  %v100_v32 = vpop.xlane.xlu1 %99 }
  0xc5   :  { %94 = vst.msk [vmem:[#allocation2] sm:$0x3] %vm93_vm7, %v92_v31 }
  0xc6   :  { %102 = vst.msk [vmem:[#allocation2] sm:$0x3] %vm101_vm8, %v100_v32 }
  0xcd   :  { %v103_v33 = vld [vmem:[#allocation2] sm:$0x3] }
  0xce   :  { %v105_v34 = vsel %vm104_vm9, %v103_v33, -inf }
  0xcf   :  { %106 = vmax.xlane.f32.xlu0 %v105_v34 }
 0x15c   :  { %v107_v35 = vpop.xlane.xlu0 %106 }
 0x15d   :  { %v108_v36 = vsub.f32 %v103_v33, %v107_v35 }
 0x15f   :  { %v109_v37 = vmul.f32 1.442695, %v108_v36 }
 0x161   :  { %138 = vpow2.f32 %v109_v37 }
 0x16b   :  { %v139_v38 = vpop.eup %138 }
 0x16c   :  { %v111_v39 = vsel %vm104_vm9, %v139_v38, 0.0 }
 0x16d   :  { %112 = vadd.xlane.f32.xlu1 %v111_v39 }
 0x1fa   :  { %v113_v40 = vpop.xlane.xlu1 %112 }
 0x1fb   :  { %140 = vrcp.f32 %v113_v40 }
 0x205   :  { %v141_v41 = vpop.eup %140 }
 0x206   :  { %v115_v42 = vmul.f32 %v141_v41, %v139_v38 }
 0x208   :  { %116 = vst.msk [vmem:[#allocation8] sm:$0x3] %vm104_vm9, %v115_v42 }
 0x209   :  { %197 = shalt.err (!%p194_p6)
}
 0x20a   :  { %s198_s10 = scalar_lea.hbm %s290_s2, 32 }
 0x20b   :  { %p199_p7 = scmp.ne.s32.totalorder %s290_s2, %s198_s10  ;;  %p202_p8 = scmp.lt.u32.totalorder %s198_s10, %s290_s2 }
 0x20d   :  { %p204_p9 = pnand %p202_p8, %p199_p7 }
 0x20f   :  { %207 = shalt.err (!%p204_p9)
}
 0x210   :  { %126 = dma.vmem_to_hbm [thread:$0]  %s124_s6, 32, %s290_s2, [#allocation5]  }
 0x211   :  { %212 = dma.done.wait [#allocation5], 32  }
 0x212   :  { %213 = vsyncadd [#allocation5], 4294967264 }
 0x213   :  { %130 = vsyncpa [#allocation4], 1 }
 0x214   :  { %131 = vsyncpa [#allocation7], 1 }
 0x215   :  { %132 = vsyncpa [#allocation5], 1 }

</bundles_post_ra>
